<compile_context>
chip_gen: v5e
topology: v5e:2x2
jax: 0.10.0
libtpu: 0.0.40
codegen_flags: <defaults>
</compile_context>

<pallas_src>
import jax
import jax.numpy as jnp
from jax.experimental import pallas as pl
from jax.experimental.pallas import tpu as pltpu


def _round_up(x, m):
    return (x + m - 1) // m * m


def _linear_kernel(x_ref, wt_ref, b_ref, o_ref):
    # x_ref : (TB, F)        streamed input tile
    # wt_ref: (F, out_dim)   VMEM-resident W^T
    # b_ref : (out_dim, 1)   VMEM-resident bias column (f32)
    # o_ref : (out_dim, TB)  lane-dense transposed output tile
    acc = jnp.dot(x_ref[...], wt_ref[...], preferred_element_type=jnp.float32)
    # Transpose only the tiny (TB, out_dim) accumulator; x stays un-transposed.
    o_ref[...] = (acc.T + b_ref[...]).astype(o_ref.dtype)


def _vmem_caps():
    """Returns (physical VMEM bytes, max scoped-vmem limit we will request)."""
    phys = 64 << 20  # conservative default (v7x per-TensorCore VMEM)
    try:
        info = pltpu.get_tpu_info()
        phys = int(getattr(info, "vmem_capacity_bytes", phys)) or phys
    except Exception:
        pass
    # Leave headroom for Mosaic internal scratch: v5e/v6e (128 MiB) -> 96 MiB,
    # v7x (64 MiB) -> 48 MiB.
    limit_cap = min((phys * 3) // 4, 96 << 20)
    return phys, limit_cap


def _pick_batch_tile(B, F, itemsize, x_budget_per_buffer):
    """Largest batch tile whose (double-buffered) x tile fits the byte budget.

    Lane-padding aware: a (TB, F) tile occupies TB * round_up(F,128) * itemsize
    bytes of VMEM.  Returns either B (single full block, always legal) or a
    multiple of 128 so the transposed (out_dim, TB) output block is a legal,
    lane-dense BlockSpec.
    """
    f_pad = _round_up(max(F, 1), 128)
    tb = max(x_budget_per_buffer // (f_pad * itemsize), 8)
    # Keep >= 2 grid steps so both TensorCores stream concurrently (v7x).
    tb = min(tb, _round_up(pl.cdiv(B, 2), 128))
    if tb >= B or B <= 256:
        return B
    return max((tb // 128) * 128, 128)


def logistic_regression_pallas(x, weight, bias):
    """Pallas path: y = x @ W^T + b.  x: (B, F), weight: (out_dim, F), bias: (out_dim,)."""
    B, F = x.shape
    out_dim = weight.shape[0]  # 2 for LogisticRegressionModel
    in_itemsize = jnp.dtype(x.dtype).itemsize
    out_dtype = x.dtype
    out_itemsize = jnp.dtype(out_dtype).itemsize

    phys_vmem, limit_cap = _vmem_caps()
    # Bigger per-buffer budget when physical VMEM is 128 MiB-class (v5e/v6e).
    x_budget = (16 << 20) if phys_vmem >= (100 << 20) else (8 << 20)

    TB = _pick_batch_tile(B, F, in_itemsize, x_budget)

    # Lane/sublane-padding-aware VMEM accounting (all buffers double-buffered).
    f_pad = _round_up(max(F, 1), 128)
    x_buf = _round_up(TB, 8) * f_pad * in_itemsize
    wt_buf = _round_up(F, 8) * _round_up(out_dim, 128) * in_itemsize
    b_buf = 8 * 128 * 4
    o_buf = _round_up(out_dim, 8) * _round_up(TB, 128) * out_itemsize
    vmem_needed = 2 * (x_buf + o_buf) + 2 * (wt_buf + b_buf)
    if vmem_needed > limit_cap:
        # Extremely wide F: even a 128-row tile overflows this generation's
        # VMEM; let XLA handle it rather than fail to compile.
        return x @ weight.T.astype(x.dtype) + bias
    vmem_limit = int(min(max(vmem_needed + vmem_needed // 2 + (1 << 20), 4 << 20),
                         limit_cap))

    wt = weight.astype(x.dtype).T                       # (F, out_dim), VMEM-resident
    b_col = bias.astype(jnp.float32).reshape(out_dim, 1)

    grid = (pl.cdiv(B, TB),)

    cost = pl.CostEstimate(
        flops=2 * B * F * out_dim,
        transcendentals=0,
        bytes_accessed=(B * F * in_itemsize
                        + F * out_dim * in_itemsize
                        + B * out_dim * out_itemsize),
    )

    out_t = pl.pallas_call(
        _linear_kernel,
        out_shape=jax.ShapeDtypeStruct((out_dim, B), out_dtype),
        grid_spec=pl.GridSpec(
            grid=grid,
            in_specs=[
                pl.BlockSpec((TB, F), lambda i: (i, 0)),          # streamed x tile
                pl.BlockSpec((F, out_dim), lambda i: (0, 0)),     # resident W^T
                pl.BlockSpec((out_dim, 1), lambda i: (0, 0)),     # resident bias
            ],
            out_specs=pl.BlockSpec((out_dim, TB), lambda i: (0, i)),
        ),
        compiler_params=pltpu.CompilerParams(
            dimension_semantics=("parallel",),   # shards batch tiles across TCs
            vmem_limit_bytes=vmem_limit,
        ),
        cost_estimate=cost,
    )(x, wt, b_col)

    # Tiny (out_dim, B) -> (B, out_dim) flip in the wrapper (negligible traffic
    # vs streaming x); matches nn.Linear output layout.
    return out_t.T


def logistic_regression_forward(x, weight, bias, force_pallas=False):
    """Forward pass of LogisticRegressionModel (nn.Linear(num_features, 2))."""
    B, F = x.shape
    x_bytes = B * F * jnp.dtype(x.dtype).itemsize
    # Below ~2 MiB the Pallas grid would only have 1-2 steps and XLA's fused
    # matmul+bias is already at roofline; launch overhead is pure loss.
    if not force_pallas and x_bytes < (2 << 20):
        return x @ weight.T.astype(x.dtype) + bias
    return logistic_regression_pallas(x, weight, bias)


if __name__ == "__main__":
    key = jax.random.PRNGKey(0)
    k_x, k_w, k_b = jax.random.split(key, 3)

    batch = 8
    num_features = 32

    # Deterministic inputs mimicking nn.Linear(num_features, 2) parameters.
    x = jax.random.normal(k_x, (batch, num_features), dtype=jnp.float32)
    weight = jax.random.normal(k_w, (2, num_features), dtype=jnp.float32) * 0.1
    bias = jax.random.normal(k_b, (2,), dtype=jnp.float32) * 0.1

    # Force the Pallas path so the kernel itself is exercised at this small size.
    out = logistic_regression_forward(x, weight, bias, force_pallas=True)
    out = jax.block_until_ready(out)

    # Reference check (also the path the dispatcher takes for tiny inputs).
    ref = x @ weight.T + bias
    assert out.shape == (batch, 2), out.shape
    assert jnp.allclose(out, ref, atol=1e-5, rtol=1e-5)

    print("KERNEL_OK")
</pallas_src>

<mosaic_0001>
module attributes {stable_mosaic.version = 11 : i64} {
  func.func @_linear_kernel(%arg0: i32, %arg1: memref<8x32xf32, #tpu.memory_space<vmem>>, %arg2: memref<32x2xf32, #tpu.memory_space<vmem>>, %arg3: memref<2x1xf32, #tpu.memory_space<vmem>>, %arg4: memref<2x8xf32, #tpu.memory_space<vmem>>) attributes {dimension_semantics = [#tpu.dimension_semantics<parallel>], iteration_bounds = array<i64: 1>, scalar_prefetch = 0 : i64, scratch_operands = 0 : i64, tpu.core_type = #tpu.core_type<tc>, window_params = [{transform_indices = @transform_0, window_bounds = array<i64: 8, 32>}, {pipeline_mode = #tpu.pipeline_mode<synchronous>, transform_indices = @transform_1, window_bounds = array<i64: 32, 2>}, {pipeline_mode = #tpu.pipeline_mode<synchronous>, transform_indices = @transform_2, window_bounds = array<i64: 2, 1>}, {transform_indices = @transform_3, window_bounds = array<i64: 2, 8>}]} {
    %c0 = arith.constant 0 : index
    %c0_0 = arith.constant 0 : index
    %0 = vector.load %arg1[%c0, %c0_0] : memref<8x32xf32, #tpu.memory_space<vmem>>, vector<8x32xf32>
    %c0_1 = arith.constant 0 : index
    %c0_2 = arith.constant 0 : index
    %1 = vector.load %arg2[%c0_1, %c0_2] : memref<32x2xf32, #tpu.memory_space<vmem>>, vector<32x2xf32>
    %cst = arith.constant dense<0.000000e+00> : vector<8x2xf32>
    %2 = tpu.matmul %0, %1, %cst {dimension_numbers = #tpu.dot_dimension_numbers<[1], [0], [0], [1], [0, 0, 1, 1], [], []>} : vector<8x32xf32>, vector<32x2xf32>, vector<8x2xf32> -> vector<8x2xf32>
    %3 = tpu.transpose %2, [1, 0] : vector<8x2xf32> -> vector<2x8xf32>
    %c0_3 = arith.constant 0 : index
    %c0_4 = arith.constant 0 : index
    %4 = vector.load %arg3[%c0_3, %c0_4] : memref<2x1xf32, #tpu.memory_space<vmem>>, vector<2x1xf32>
    %5 = vector.broadcast %4 : vector<2x1xf32> to vector<2x8xf32>
    %6 = arith.addf %3, %5 : vector<2x8xf32>
    %c0_5 = arith.constant 0 : index
    %c0_6 = arith.constant 0 : index
    %7 = vector.load %arg4[%c0_5, %c0_6] : memref<2x8xf32, #tpu.memory_space<vmem>>, vector<2x8xf32>
    tpu.vector_store %arg4[%c0_5, %c0_6], %6 {strides = array<i32>} : memref<2x8xf32, #tpu.memory_space<vmem>>, vector<2x8xf32>,
    return
  }
  func.func @transform_0(%arg0: i32) -> (i32, i32) {
    %c0_i32 = arith.constant 0 : i32
    %c0_i32_0 = arith.constant 0 : i32
    return %arg0, %c0_i32 : i32, i32
  }
  func.func @transform_1(%arg0: i32) -> (i32, i32) {
    %c0_i32 = arith.constant 0 : i32
    %c0_i32_0 = arith.constant 0 : i32
    %c0_i32_1 = arith.constant 0 : i32
    return %c0_i32, %c0_i32_0 : i32, i32
  }
  func.func @transform_2(%arg0: i32) -> (i32, i32) {
    %c0_i32 = arith.constant 0 : i32
    %c0_i32_0 = arith.constant 0 : i32
    %c0_i32_1 = arith.constant 0 : i32
    return %c0_i32, %c0_i32_0 : i32, i32
  }
  func.func @transform_3(%arg0: i32) -> (i32, i32) {
    %c0_i32 = arith.constant 0 : i32
    %c0_i32_0 = arith.constant 0 : i32
    return %c0_i32, %arg0 : i32, i32
  }
}

</mosaic_0001>

<bundles_post_ra>
// kernel: tpu_custom_call.1
= control target key start
LH: loop header
LB: loop body
LE: loop exit
PB: predicated region body
PF: predicated region fallthrough
CT: control target
= control target key end

     0   :  { %v132_v2 = vmov 0   ;;  %s175_s0 = inlined_call_operand.vmem [shape: f32[8,32], index: 0, kind: input, shape index: {}]   ;;  %s176_s1 = inlined_call_operand.vmem [shape: f32[32,2], index: 1, kind: input, shape index: {}]   ;;  %s177_s2 = inlined_call_operand.vmem [shape: f32[2,1], index: 2, kind: input, shape index: {}]   ;;  %s178_s3 = inlined_call_operand.hbm [shape: f32[2,8], index: 3, kind: output, shape index: {}]  }
   0x1   :  { %v19_v0 = vld [vmem:[%s176_s1 + $0x18] sm:$0xff]  ;;  %v18_v1 = vld [vmem:[%s176_s1 + $0x10] sm:$0xff]  ;;  %105 = vset.pattern.permute.xlu0 %v132_v2  ;;  %v76_v3 = vld [vmem:[%s177_s2] sm:$0x3] }
   0x2   :  { %36 = vmatpush.msra.mxu0 %v19_v0  ;;  %v17_v4 = vld [vmem:[%s176_s1 + $0x8] sm:$0xff]  ;;  %79 = vperm.xlu0 %105, %v76_v3  }
   0x3   :  { %8 = vsyncpa [#allocation3], 0  ;;  %v16_v5 = vld [vmem:[%s176_s1] sm:$0xff]  ;;  %vm20_vm0 = vcmask 261120   ;;  %s133_s2 = smov [#allocation2]   ;;  %s92_s27 = sshll.u32 %s178_s3, 4  ;;  %s93_s27 = int_to_ptr.hbm [resolvable:$true] %s92_s27 }
   0x4   :  { %37 = vmatpush.msra.mxu0 %v18_v1  ;;  %v15_v6 = vld [vmem:[%s175_s0] sm:$0xff]  ;;  %s90_s24 = sshll.u32 %s133_s2, 4  ;;  %vm83_vm1 = vcmask 58368   ;;  %s91_s24 = int_to_ptr.vmem [resolvable:$true] %s90_s24 }
   0x6   :  { %38 = vmatpush.msra.mxu0 %v17_v4 }
   0x8   :  { %39 = vmatpush.msra.mxu0 %v16_v5 }
   0x9   :  { %101 = vmatmul.msk.f32.vlgmr.msra.gmra.mxu0 %vm20_vm0, %v15_v6 }
  0x74   :  { %v80_v8 = vpop.permute.xlu0 %79 }
  0x86   :  { %v41_v7 = vpop.f32.mrf.mxu0 }
  0x87   :  { %44 = vxpose.xlu0.b32.start.end [1/1] (short) (narrow) %v41_v7, 8 }
 0x12b   :  { %v60_v9 = vpop.trf.xlu0 }
 0x12c   :  { %v82_v10 = vadd.f32 %v80_v8, %v60_v9 }
 0x12e   :  { %84 = vst.msk [vmem:[#allocation2] sm:$0x3] %vm83_vm1, %v82_v10 }
 0x12f   :  { %95 = dma.vmem_to_hbm [thread:$0]  %s91_s24, 32, %s93_s27, [#allocation3]  }
 0x130   :  { %130 = dma.done.wait [#allocation3], 32  }
 0x131   :  { %131 = vsyncadd [#allocation3], 4294967264 }
 0x132   :  { %100 = vsyncpa [#allocation3], 1 }

</bundles_post_ra>
